<compile_context>
chip_gen: v5e
topology: v5e:2x2
jax: 0.10.0
libtpu: 0.0.40
codegen_flags: <defaults>
</compile_context>

<pallas_src>
import functools

import jax
import jax.numpy as jnp
from jax import lax
from jax.experimental import pallas as pl
from jax.experimental.pallas import tpu as pltpu


def _round_up(x, m):
    return ((x + m - 1) // m) * m


# ------------------------- fused embedding + LayerNorm kernel -------------------------

def _embed_layernorm_kernel(ids_ref, tbl_ref, g_ref, b_ref, o_ref, x_ref, *,
                            eps, row_tile, vocab):
    """One grid step: gather `row_tile` embedding rows, LayerNorm them, store the tile."""
    base = pl.program_id(0) * row_tile

    # Memory-side row gather from the VMEM-resident table (no MXU work, no one-hot).
    def gather_row(r, carry):
        idx = ids_ref[base + r]                       # scalar read from SMEM
        idx = jnp.clip(idx, 0, vocab - 1)             # guard against OOB VMEM reads
        x_ref[pl.ds(r, 1), :] = tbl_ref[pl.ds(idx, 1), :].astype(jnp.float32)
        return carry

    lax.fori_loop(0, row_tile, gather_row, 0)

    # Single-pass LayerNorm over d_model (VPU elementwise, rsqrt on the EUP).
    x = x_ref[...]
    inv_d = 1.0 / x.shape[-1]
    s1 = jnp.sum(x, axis=-1, keepdims=True)
    s2 = jnp.sum(x * x, axis=-1, keepdims=True)
    mu = s1 * inv_d
    var = s2 * inv_d - mu * mu
    inv = lax.rsqrt(var + eps)
    o_ref[...] = ((x - mu) * inv * g_ref[...] + b_ref[...]).astype(o_ref.dtype)


def embedding_layernorm(token_ids, table, gamma, beta, *, eps=1e-5, row_tile=512):
    """out[..., :] = LayerNorm(table[token_ids[...], :]) * gamma + beta."""
    orig_shape = token_ids.shape
    vocab, d_model = table.shape

    n = 1
    for s in orig_shape:
        n *= int(s)

    flat = token_ids.reshape(n).astype(jnp.int32)

    # Largest row tile <= row_tile that is a multiple of 8; pad the flattened ids so no
    # remainder rows are dropped (padded rows look up token 0 and are sliced off).
    rt = min(int(row_tile), _round_up(n, 8))
    rt = max(8, (rt // 8) * 8)
    n_pad = _round_up(n, rt)
    if n_pad != n:
        flat = jnp.pad(flat, (0, n_pad - n))

    grid = (n_pad // rt,)

    # VMEM budget: resident table (single-buffered) + double-buffered output tile
    # + f32 gather scratch + gamma/beta + compiler scratch margin; capped below the
    # physical per-core VMEM so v7x (64 MiB/TC) keeps headroom.
    itemsize = jnp.dtype(table.dtype).itemsize
    needed = (vocab * d_model * itemsize            # resident table (single buffer)
              + 2 * rt * d_model * itemsize         # output tile, double-buffered
              + rt * d_model * 4                    # f32 gather scratch
              + 2 * d_model * 4                     # gamma, beta
              + (4 << 20))                          # margin for internal scratch
    try:
        phys_vmem = int(pltpu.get_tpu_info().vmem_capacity_bytes)
    except Exception:
        phys_vmem = 64 * 1024 * 1024                # conservative (v7x per-TC)
    vmem_limit = min(max(needed, 32 * 1024 * 1024), int(phys_vmem * 0.9))

    grid_spec = pltpu.PrefetchScalarGridSpec(
        num_scalar_prefetch=1,                      # token ids -> SMEM
        grid=grid,
        in_specs=[
            # Whole table resident in VMEM for the entire grid (no double-buffering).
            pl.BlockSpec(memory_space=pltpu.MemorySpace.VMEM),
            pl.BlockSpec(memory_space=pltpu.MemorySpace.VMEM),   # gamma (1, d_model)
            pl.BlockSpec(memory_space=pltpu.MemorySpace.VMEM),   # beta  (1, d_model)
        ],
        out_specs=pl.BlockSpec((rt, d_model), lambda i, ids: (i, 0)),   # lane-dense tile
        scratch_shapes=[pltpu.VMEM((rt, d_model), jnp.float32)],
    )

    out = pl.pallas_call(
        functools.partial(_embed_layernorm_kernel, eps=eps, row_tile=rt, vocab=vocab),
        out_shape=jax.ShapeDtypeStruct((n_pad, d_model), table.dtype),
        grid_spec=grid_spec,
        compiler_params=pltpu.CompilerParams(
            dimension_semantics=("parallel",),      # row tiles shard across TCs (v7x)
            vmem_limit_bytes=vmem_limit,
        ),
    )(flat, table, gamma.reshape(1, d_model), beta.reshape(1, d_model))

    return out[:n].reshape(*orig_shape, d_model)


# --------------------------------------- test ---------------------------------------

def _reference(token_ids, table, gamma, beta, eps=1e-5):
    emb = table[token_ids]                                      # (B, T, d_model)
    mu = jnp.mean(emb, axis=-1, keepdims=True)
    var = jnp.mean((emb - mu) ** 2, axis=-1, keepdims=True)
    return (emb - mu) * lax.rsqrt(var + eps) * gamma + beta


if __name__ == "__main__":
    # Embedding(d_model=128, vocab_size=1000); input token ids of shape (batch=2, seq=8).
    B, T, VOCAB, D = 2, 8, 1000, 128

    key = jax.random.PRNGKey(0)
    k_ids, k_tbl = jax.random.split(key)

    token_ids = jax.random.randint(k_ids, (B, T), minval=0, maxval=VOCAB, dtype=jnp.int32)
    token_ids = token_ids.at[:, -1].set(0)                      # exercise padding_idx row

    table = (jax.random.normal(k_tbl, (VOCAB, D)) * 0.02).astype(jnp.float32)
    table = table.at[0].set(0.0)                                # padding_idx=0 row is zeros at init
    gamma = jnp.ones((D,), jnp.float32)
    beta = jnp.zeros((D,), jnp.float32)

    out = embedding_layernorm(token_ids, table, gamma, beta)
    out = jax.block_until_ready(out)

    ref = _reference(token_ids, table, gamma, beta)
    assert out.shape == (B, T, D)
    assert bool(jnp.all(jnp.isfinite(out)))
    assert bool(jnp.max(jnp.abs(out - ref)) < 1e-3), "mismatch vs pure-JAX reference"

    print("KERNEL_OK")
</pallas_src>

<mosaic_0001>
module attributes {stable_mosaic.version = 11 : i64} {
  func.func @_embed_layernorm_kernel(%arg0: i32, %arg1: memref<16xi32, #tpu.memory_space<smem>>, %arg2: memref<1000x128xf32, #tpu.memory_space<vmem>>, %arg3: memref<1x128xf32, #tpu.memory_space<vmem>>, %arg4: memref<1x128xf32, #tpu.memory_space<vmem>>, %arg5: memref<16x128xf32, #tpu.memory_space<vmem>>, %arg6: memref<16x128xf32, #tpu.memory_space<vmem>>) attributes {dimension_semantics = [#tpu.dimension_semantics<parallel>], iteration_bounds = array<i64: 1>, scalar_prefetch = 1 : i64, scratch_operands = 1 : i64, tpu.core_type = #tpu.core_type<tc>, window_params = [{pipeline_mode = #tpu.pipeline_mode<synchronous>, transform_indices = @transform_0, window_bounds = array<i64: 1000, 128>}, {pipeline_mode = #tpu.pipeline_mode<synchronous>, transform_indices = @transform_1, window_bounds = array<i64: 1, 128>}, {pipeline_mode = #tpu.pipeline_mode<synchronous>, transform_indices = @transform_2, window_bounds = array<i64: 1, 128>}, {transform_indices = @transform_3, window_bounds = array<i64: 16, 128>}]} {
    %c16_i32 = arith.constant 16 : i32
    %0 = arith.muli %arg0, %c16_i32 : i32
    %c0_i32 = arith.constant 0 : i32
    %c16_i32_0 = arith.constant 16 : i32
    %1 = arith.addi %c0_i32, %c16_i32_0 : i32
    %c1_i32 = arith.constant 1 : i32
    scf.for %arg7 = %c0_i32 to %1 step %c1_i32  : i32 {
      %28 = arith.addi %0, %arg7 : i32
      %29 = arith.index_cast %28 : i32 to index
      %30 = memref.load %arg1[%29] : memref<16xi32, #tpu.memory_space<smem>>
      %c0_i32_13 = arith.constant 0 : i32
      %c999_i32 = arith.constant 999 : i32
      %31 = arith.maxsi %c0_i32_13, %30 : i32
      %32 = arith.minsi %c999_i32, %31 : i32
      %33 = arith.index_cast %32 : i32 to index
      %c0_14 = arith.constant 0 : index
      %34 = vector.load %arg2[%33, %c0_14] : memref<1000x128xf32, #tpu.memory_space<vmem>>, vector<1x128xf32>
      %35 = arith.index_cast %arg7 : i32 to index
      %c0_15 = arith.constant 0 : index
      %36 = vector.load %arg6[%35, %c0_15] : memref<16x128xf32, #tpu.memory_space<vmem>>, vector<1x128xf32>
      tpu.vector_store %arg6[%35, %c0_15], %34 {strides = array<i32>} : memref<16x128xf32, #tpu.memory_space<vmem>>, vector<1x128xf32>,
    }
    %c16_i32_1 = arith.constant 16 : i32
    %c0 = arith.constant 0 : index
    %c0_2 = arith.constant 0 : index
    %2 = vector.load %arg6[%c0, %c0_2] : memref<16x128xf32, #tpu.memory_space<vmem>>, vector<16x128xf32>
    %cst = arith.constant dense<0.000000e+00> : vector<16xf32>
    %3 = vector.multi_reduction <add>, %2, %cst [1] : vector<16x128xf32> to vector<16xf32>
    %4 = vector.shape_cast %3 : vector<16xf32> to vector<16x1xf32>
    %5 = arith.mulf %2, %2 : vector<16x128xf32>
    %cst_3 = arith.constant dense<0.000000e+00> : vector<16xf32>
    %6 = vector.multi_reduction <add>, %5, %cst_3 [1] : vector<16x128xf32> to vector<16xf32>
    %7 = vector.shape_cast %6 : vector<16xf32> to vector<16x1xf32>
    %cst_4 = arith.constant 7.812500e-03 : f32
    %8 = vector.broadcast %cst_4 : f32 to vector<16x1xf32>
    %9 = arith.mulf %4, %8 : vector<16x1xf32>
    %cst_5 = arith.constant 7.812500e-03 : f32
    %10 = vector.broadcast %cst_5 : f32 to vector<16x1xf32>
    %11 = arith.mulf %7, %10 : vector<16x1xf32>
    %12 = arith.mulf %9, %9 : vector<16x1xf32>
    %13 = arith.subf %11, %12 : vector<16x1xf32>
    %cst_6 = arith.constant 9.99999974E-6 : f32
    %14 = vector.broadcast %cst_6 : f32 to vector<16x1xf32>
    %15 = arith.addf %13, %14 : vector<16x1xf32>
    %16 = math.rsqrt %15 : vector<16x1xf32>
    %17 = vector.broadcast %9 : vector<16x1xf32> to vector<16x128xf32>
    %18 = arith.subf %2, %17 : vector<16x128xf32>
    %19 = vector.broadcast %16 : vector<16x1xf32> to vector<16x128xf32>
    %20 = arith.mulf %18, %19 : vector<16x128xf32>
    %c0_7 = arith.constant 0 : index
    %c0_8 = arith.constant 0 : index
    %21 = vector.load %arg3[%c0_7, %c0_8] : memref<1x128xf32, #tpu.memory_space<vmem>>, vector<1x128xf32>
    %22 = vector.broadcast %21 : vector<1x128xf32> to vector<16x128xf32>
    %23 = arith.mulf %20, %22 : vector<16x128xf32>
    %c0_9 = arith.constant 0 : index
    %c0_10 = arith.constant 0 : index
    %24 = vector.load %arg4[%c0_9, %c0_10] : memref<1x128xf32, #tpu.memory_space<vmem>>, vector<1x128xf32>
    %25 = vector.broadcast %24 : vector<1x128xf32> to vector<16x128xf32>
    %26 = arith.addf %23, %25 : vector<16x128xf32>
    %c0_11 = arith.constant 0 : index
    %c0_12 = arith.constant 0 : index
    %27 = vector.load %arg5[%c0_11, %c0_12] : memref<16x128xf32, #tpu.memory_space<vmem>>, vector<16x128xf32>
    tpu.vector_store %arg5[%c0_11, %c0_12], %26 {strides = array<i32>} : memref<16x128xf32, #tpu.memory_space<vmem>>, vector<16x128xf32>,
    return
  }
  func.func @transform_0(%arg0: i32, %arg1: memref<16xi32, #tpu.memory_space<smem>>) -> (i32, i32) {
    %c0_i32 = arith.constant 0 : i32
    %c0_i32_0 = arith.constant 0 : i32
    %c0_i32_1 = arith.constant 0 : i32
    return %c0_i32, %c0_i32_0 : i32, i32
  }
  func.func @transform_1(%arg0: i32, %arg1: memref<16xi32, #tpu.memory_space<smem>>) -> (i32, i32) {
    %c0_i32 = arith.constant 0 : i32
    %c0_i32_0 = arith.constant 0 : i32
    %c0_i32_1 = arith.constant 0 : i32
    return %c0_i32, %c0_i32_0 : i32, i32
  }
  func.func @transform_2(%arg0: i32, %arg1: memref<16xi32, #tpu.memory_space<smem>>) -> (i32, i32) {
    %c0_i32 = arith.constant 0 : i32
    %c0_i32_0 = arith.constant 0 : i32
    %c0_i32_1 = arith.constant 0 : i32
    return %c0_i32, %c0_i32_0 : i32, i32
  }
  func.func @transform_3(%arg0: i32, %arg1: memref<16xi32, #tpu.memory_space<smem>>) -> (i32, i32) {
    %c0_i32 = arith.constant 0 : i32
    %c0_i32_0 = arith.constant 0 : i32
    return %arg0, %c0_i32 : i32, i32
  }
}

</mosaic_0001>

<bundles_post_ra>
// kernel: tpu_custom_call.1
= control target key start
LH: loop header
LB: loop body
LE: loop exit
PB: predicated region body
PF: predicated region fallthrough
CT: control target
= control target key end

     0   :  { %s243_s18 = smov [#allocation4]   ;;  %s294_s0 = inlined_call_operand.hbm [shape: s32[16], index: 0, kind: input, shape index: {}]   ;;  %s295_s1 = inlined_call_operand.hbm [shape: f32[1000,128], index: 1, kind: input, shape index: {}]   ;;  %s296_s2 = inlined_call_operand.vmem [shape: f32[1,128], index: 2, kind: input, shape index: {}]   ;;  %s297_s3 = inlined_call_operand.vmem [shape: f32[1,128], index: 3, kind: input, shape index: {}]   ;;  %s298_s4 = inlined_call_operand.hbm [shape: f32[16,128], index: 4, kind: output, shape index: {}]  }
   0x1   :  { %s10_s17 = sshll.u32 %s294_s0, 4  ;;  %s11_s17 = int_to_ptr.hbm [resolvable:$true] %s10_s17 }
   0x2   :  { %13 = dma.hbm_to_smem %s11_s17, 16, %s243_s18, [#allocation3] }
   0x3   :  { %233 = dma.done.wait [#allocation3], 16 }
   0x4   :  { %234 = vsyncadd [#allocation3], 4294967280 }
   0x5   :  { %16 = sfence }
   0x6   :  { %17 = vsyncpa [#allocation6], 0 }
   0x7   :  { %18 = vsyncpa [#allocation7], 0  ;;  %s23_s21 = sshll.u32 %s295_s1, 4  ;;  %s244_s22 = smov [#allocation5]   ;;  %s24_s21 = int_to_ptr.hbm [resolvable:$true] %s23_s21 }
   0x8   :  { %s25_s23 = sshll.u32 %s244_s22, 4  ;;  %s245_s24 = smov 128   ;;  %s26_s23 = int_to_ptr.vmem [resolvable:$true] %s25_s23 }
   0x9   :  { %s246_s25 = smov 8  }
   0xa   :  { %31 = dma.hbm_to_vmem [thread:$0]  %s24_s21, 16000, %s26_s23, [#allocation6], %s245_s24, %s245_s24, %s246_s25  }
   0xb   :  { %235 = dma.done.wait [#allocation6], 16000  }
   0xc   :  { %236 = vsyncadd [#allocation6], 4294951296  ;;  %s239_s0 = smov 0  }
   0xd LB: > { %s48_s26 = sld [smem:[#allocation4 + %s241_s0]]  ;;  %s55_s27 = scalar_lea.vmem [#allocation2], %s241_s0  ;;  %s241_s0 = sphi %s239_s0, %s46_s0  }
   0xe   : > { %s46_s0 = sadd.s32 1, %s241_s0  }
   0xf   : > { %p43_p2 = scmp.ge.s32.totalorder %s46_s0, 16  }
  0x10   :  { %v163_v28 = vld [vmem:[%s296_s2] ss:$0 sm:$0xff] (%p43_p2)  ;;  %s247_s2 = smov (%p43_p2), [#allocation8]   ;;  %s123_s9 = sshll.u32 (%p43_p2), %s298_s4, 4  ;;  %s124_s9 = int_to_ptr.hbm [resolvable:$true] %s123_s9 }
  0x11   :  { %v164_v32 = vld [vmem:[%s297_s3] ss:$0 sm:$0xff] (%p43_p2)  ;;  %s121_s6 = sshll.u32 (%p43_p2), %s247_s2, 4  ;;  %s122_s6 = int_to_ptr.vmem [resolvable:$true] %s121_s6 }
  0x13   : > { %p49_p0 = scmp.gt.s32.totalorder %s48_s26, 0  ;;  %p143_p1 = scmp.lt.s32.totalorder %s48_s26, 999 }
  0x15   : > { %s300_s26 = smov (!%p49_p0, %s48_s26), 0  ;;  %45 = sbr.rel (!%p43_p2) target bundleno = 13 (0xd), region = 45 }
  0x16   : > { %s302_s26 = smov (!%p143_p1, %s300_s26), 999 }
  0x17   : > { %s53_s1 = scalar_lea.vmem [#allocation5], %s302_s26 }
  0x18   : > { %v54_v0 = vld [vmem:[%s53_s1] sm:$0x1] }
  0x19   : > { %56 = vst [vmem:[%s55_s27] sm:$0x1] %v54_v0 }
  0x20   :  { %v57_v1 = vld [vmem:[#allocation2] sm:$0xff]  ;;  %v58_v3 = vld [vmem:[#allocation2 + $0x8] sm:$0xff] }
  0x21   :  { %59 = vadd.xlane.f32.xlu0 %v57_v1  ;;  %v63_v2 = vmul.f32 %v57_v1, %v57_v1  ;;  %v64_v4 = vmul.f32 %v58_v3, %v58_v3 }
  0x23   :  { %65 = vadd.xlane.f32.xlu1 %v63_v2 }
  0x29   :  { %61 = vadd.xlane.f32.xlu0 %v58_v3 }
  0x2b   :  { %67 = vadd.xlane.f32.xlu1 %v64_v4 }
  0x94   :  { %v60_v5 = vpop.xlane.xlu0 %59 }
  0x95   :  { %v69_v6 = vmul.f32 0.0078125, %v60_v5 }
  0x96   :  { %v66_v7 = vpop.xlane.xlu1 %65 }
  0x97   :  { %v73_v8 = vmul.f32 %v69_v6, %v69_v6  ;;  %v71_v9 = vmul.f32 0.0078125, %v66_v7  ;;  %v99_v27 = vsub.f32 %v57_v1, %v69_v6 }
  0x99   :  { %v75_v10 = vsub.f32 %v71_v9, %v73_v8 }
  0x9b   :  { %v77_v11 = vadd.f32 1e-05, %v75_v10 }
  0x9c   :  { %v62_v12 = vpop.xlane.xlu0 %61 }
  0x9d   :  { %165 = vrsqrt.f32 %v77_v11  ;;  %v70_v13 = vmul.f32 0.0078125, %v62_v12  ;;  %vm85_vm1 = vweird.f32 %v77_v11 }
  0x9e   :  { %v68_v14 = vpop.xlane.xlu1 %67 }
  0x9f   :  { %v74_v15 = vmul.f32 %v70_v13, %v70_v13  ;;  %v72_v16 = vmul.f32 0.0078125, %v68_v14  ;;  %v100_v38 = vsub.f32 %v58_v3, %v70_v13 }
  0xa1   :  { %v76_v17 = vsub.f32 %v72_v16, %v74_v15 }
  0xa3   :  { %v166_v18 = vpop.eup %165  ;;  %v78_v19 = vadd.f32 1e-05, %v76_v17 }
  0xa4   :  { %v80_v20 = vmul.f32 %v166_v18, %v77_v11  ;;  %vm86_vm0 = vweird.f32 %v166_v18 }
  0xa5   :  { %167 = vrsqrt.f32 %v78_v19  ;;  %vm87_vm2 = vmor %vm85_vm1, %vm86_vm0  ;;  %vm95_vm4 = vweird.f32 %v78_v19 }
  0xa6   :  { %v81_v21 = vmul.f32 %v166_v18, %v80_v20 }
  0xa8   :  { %v82_v22 = vmul.f32 0.5, %v81_v21 }
  0xaa   :  { %v83_v23 = vsub.f32 1.5, %v82_v22 }
  0xab   :  { %v168_v24 = vpop.eup %167 }
  0xac   :  { %v84_v25 = vmul.f32 %v166_v18, %v83_v23  ;;  %v90_v26 = vmul.f32 %v168_v24, %v78_v19  ;;  %vm96_vm3 = vweird.f32 %v168_v24 }
  0xad   :  { %vm97_vm5 = vmor %vm95_vm4, %vm96_vm3 }
  0xae   :  { %v91_v29 = vmul.f32 %v168_v24, %v90_v26  ;;  %v88_v30 = vsel %vm87_vm2, %v166_v18, %v84_v25 }
  0xaf   :  { %v101_v31 = vmul.f32 %v99_v27, %v88_v30 }
  0xb0   :  { %v92_v33 = vmul.f32 0.5, %v91_v29 }
  0xb1   :  { %v107_v34 = vmul.f32 %v163_v28, %v101_v31 }
  0xb2   :  { %v93_v35 = vsub.f32 1.5, %v92_v33 }
  0xb3   :  { %v113_v36 = vadd.f32 %v164_v32, %v107_v34 }
  0xb4   :  { %v94_v37 = vmul.f32 %v168_v24, %v93_v35 }
  0xb5   :  { %115 = vst [vmem:[#allocation8] sm:$0xff] %v113_v36 }
  0xb6   :  { %v98_v39 = vsel %vm97_vm5, %v168_v24, %v94_v37 }
  0xb7   :  { %v102_v40 = vmul.f32 %v100_v38, %v98_v39 }
  0xb9   :  { %v108_v41 = vmul.f32 %v163_v28, %v102_v40 }
  0xbb   :  { %v114_v42 = vadd.f32 %v164_v32, %v108_v41 }
  0xbd   :  { %116 = vst [vmem:[#allocation8 + $0x8] sm:$0xff] %v114_v42 }
  0xbe   :  { %129 = dma.vmem_to_hbm [thread:$0]  %s122_s6, 256, %s124_s9, [#allocation7], %s245_s24, %s245_s24, %s246_s25  }
  0xbf   :  { %237 = dma.done.wait [#allocation7], 256  }
  0xc0   :  { %238 = vsyncadd [#allocation7], 4294967040 }
  0xc1   :  { %134 = vsyncpa [#allocation6], 1 }
  0xc2   :  { %135 = vsyncpa [#allocation7], 1 }

</bundles_post_ra>
